<compile_context>
chip_gen: v6e
topology: v6e:2x2x1
jax: 0.10.0
libtpu: 0.0.40
codegen_flags: <defaults>
</compile_context>

<pallas_src>
import math
import functools

import jax
import jax.numpy as jnp
from jax.experimental import pallas as pl
from jax.experimental.pallas import tpu as pltpu


def _flash_attn_kernel(q_ref, k_ref, v_ref, o_ref, m_sc, l_sc, acc_sc, *,
                       kv_seq_len, block_kv, masked):
    # q_ref: (1, TQ, Dk)  k_ref/v_ref: (1, TK, Dk)  o_ref: (1, TQ, Dk)
    # m_sc/l_sc: (TQ, 1) f32; acc_sc: (TQ, Dk) f32
    kv = pl.program_id(2)

    @pl.when(kv == 0)
    def _init():
        m_sc[...] = jnp.full(m_sc.shape, -jnp.inf, dtype=m_sc.dtype)
        l_sc[...] = jnp.zeros_like(l_sc)
        acc_sc[...] = jnp.zeros_like(acc_sc)

    # Operands arrive already scaled (q), head-major and in the compute dtype
    # (bf16 for f32 inputs) -- no per-step scaling / casting / relayout.
    q = q_ref[0]                      # (TQ, Dk)
    k = k_ref[0]                      # (TK, Dk)
    v = v_ref[0]                      # (TK, Dk)

    # NT-form QK^T: contract over Dk of both operands, no k transpose in VMEM.
    s = jax.lax.dot_general(q, k, (((1,), (1,)), ((), ())),
                            preferred_element_type=jnp.float32)   # (TQ, TK)

    if masked:
        # Mask key columns that are wrapper-side padding.
        col = kv * block_kv + jax.lax.broadcasted_iota(jnp.int32, s.shape, 1)
        s = jnp.where(col < kv_seq_len, s, -1e30)

    # Online (streaming) softmax update, all in f32.
    m_prev = m_sc[...]                                            # (TQ, 1)
    m_new = jnp.maximum(m_prev, jnp.max(s, axis=-1, keepdims=True))
    alpha = jnp.exp(m_prev - m_new)                               # (TQ, 1)
    p = jnp.exp(s - m_new)                                        # (TQ, TK)

    l_sc[...] = alpha * l_sc[...] + jnp.sum(p, axis=-1, keepdims=True)
    pv = jax.lax.dot_general(p.astype(v.dtype), v, (((1,), (0,)), ((), ())),
                             preferred_element_type=jnp.float32)  # (TQ, Dk)
    acc_sc[...] = alpha * acc_sc[...] + pv
    m_sc[...] = m_new

    @pl.when(kv == pl.num_programs(2) - 1)
    def _finalize():
        # Deferred normalization; approx reciprocal -> EUP slot.
        inv_l = pl.reciprocal(l_sc[...], approx=True)             # (TQ, 1)
        o_ref[0] = (acc_sc[...] * inv_l).astype(o_ref.dtype)      # dense store


def _round_up(x, m):
    return ((x + m - 1) // m) * m


def scaled_dot_product_attention(q, k, v, *, block_q=256, block_kv=256,
                                 compute_dtype=None):
    """q, k, v: [B, S, H, Dk] -> [B, S, H, Dk] (matches the PyTorch module)."""
    B, S, H, Dk = q.shape
    orig_dtype = q.dtype
    scale = 1.0 / math.sqrt(Dk)

    if compute_dtype is None:
        # bf16 MXU/streaming dtype for f32 inputs; accumulation stays f32.
        compute_dtype = jnp.bfloat16 if q.dtype == jnp.float32 else q.dtype

    # Sublane-aligned tiles, capped at the requested block sizes.  S is padded
    # to a tile multiple instead of silently shrinking the tiles.
    tq = min(block_q, _round_up(S, 8))
    tk = min(block_kv, _round_up(S, 8))
    s_pad = _round_up(S, math.lcm(tq, tk))
    masked = s_pad != S

    # One-time relayout: [B, S, H, Dk] -> head-major [B*H, S, Dk], fused with
    # the compute-dtype cast (and the 1/sqrt(Dk) fold for q) and the padding.
    def _prep(x, apply_scale):
        xt = jnp.transpose(x, (0, 2, 1, 3)).reshape(B * H, S, Dk)
        if apply_scale:
            xt = xt * scale
        xt = xt.astype(compute_dtype)
        if masked:
            xt = jnp.pad(xt, ((0, 0), (0, s_pad - S), (0, 0)))
        return xt

    qh = _prep(q, True)
    kh = _prep(k, False)
    vh = _prep(v, False)

    grid = (B * H, s_pad // tq, s_pad // tk)   # kv (reduction) axis last

    kernel = functools.partial(_flash_attn_kernel, kv_seq_len=S, block_kv=tk,
                               masked=masked)

    q_spec = pl.BlockSpec((1, tq, Dk), lambda b, qi, ki: (b, qi, 0))
    kv_spec = pl.BlockSpec((1, tk, Dk), lambda b, qi, ki: (b, ki, 0))
    out_spec = pl.BlockSpec((1, tq, Dk), lambda b, qi, ki: (b, qi, 0))

    out = pl.pallas_call(
        kernel,
        out_shape=jax.ShapeDtypeStruct((B * H, s_pad, Dk), orig_dtype),
        grid_spec=pltpu.PrefetchScalarGridSpec(
            num_scalar_prefetch=0,
            grid=grid,
            in_specs=[q_spec, kv_spec, kv_spec],
            out_specs=out_spec,
            scratch_shapes=[
                pltpu.VMEM((tq, 1), jnp.float32),    # running max m
                pltpu.VMEM((tq, 1), jnp.float32),    # running denom l
                pltpu.VMEM((tq, Dk), jnp.float32),   # output accumulator
            ],
        ),
        compiler_params=pltpu.CompilerParams(
            # (batch*head, q-tile) shard across TCs; kv is the accumulator
            # axis.  Per-block working set is a few hundred KiB even at
            # 256-wide tiles, so the default scoped VMEM is ample on
            # v5e/v6e/v7x.  (pipeline_mode=pl.Buffered(3) on kv_spec is a
            # further knob if profiling shows exposed K/V DMA.)
            dimension_semantics=("parallel", "parallel", "arbitrary"),
        ),
    )(qh, kh, vh)

    # Undo padding and the one-time head-major relayout.
    out = out[:, :S, :].reshape(B, H, S, Dk)
    return jnp.transpose(out, (0, 2, 1, 3))


def _reference(q, k, v):
    """Pure-JAX f32 reference mirroring the PyTorch forward exactly."""
    Dk = q.shape[-1]
    qt = jnp.transpose(q, (0, 2, 1, 3))
    kt = jnp.transpose(k, (0, 2, 1, 3))
    vt = jnp.transpose(v, (0, 2, 1, 3))
    scores = jnp.einsum("bhqd,bhkd->bhqk", qt, kt) / math.sqrt(Dk)
    attn = jax.nn.softmax(scores, axis=-1)
    out = jnp.einsum("bhqk,bhkd->bhqd", attn, vt)
    return jnp.transpose(out, (0, 2, 1, 3))


if __name__ == "__main__":
    B, S, H, Dk = 2, 8, 2, 32
    key = jax.random.PRNGKey(0)
    kq, kk, kv = jax.random.split(key, 3)
    q = jax.random.normal(kq, (B, S, H, Dk), dtype=jnp.float32)
    k = jax.random.normal(kk, (B, S, H, Dk), dtype=jnp.float32)
    v = jax.random.normal(kv, (B, S, H, Dk), dtype=jnp.float32)

    out = scaled_dot_product_attention(q, k, v)
    out = jax.block_until_ready(out)

    ref = _reference(q, k, v)
    assert out.shape == (B, S, H, Dk)
    # Tolerance re-baselined for bf16 MXU inputs + approx reciprocal
    # (accumulation stays f32).
    assert jnp.allclose(out, ref, atol=3e-2, rtol=3e-2), "mismatch vs reference"
    print("KERNEL_OK")
</pallas_src>

<mosaic_0001>
module attributes {stable_mosaic.version = 11 : i64} {
  func.func @_flash_attn_kernel(%arg0: i32, %arg1: i32, %arg2: i32, %arg3: memref<1x8x32xbf16, #tpu.memory_space<vmem>>, %arg4: memref<1x8x32xbf16, #tpu.memory_space<vmem>>, %arg5: memref<1x8x32xbf16, #tpu.memory_space<vmem>>, %arg6: memref<1x8x32xf32, #tpu.memory_space<vmem>>, %arg7: memref<8x1xf32, #tpu.memory_space<vmem>>, %arg8: memref<8x1xf32, #tpu.memory_space<vmem>>, %arg9: memref<8x32xf32, #tpu.memory_space<vmem>>) attributes {dimension_semantics = [#tpu.dimension_semantics<parallel>, #tpu.dimension_semantics<parallel>, #tpu.dimension_semantics<arbitrary>], iteration_bounds = array<i64: 4, 1, 1>, scalar_prefetch = 0 : i64, scratch_operands = 3 : i64, tpu.core_type = #tpu.core_type<tc>, window_params = [{transform_indices = @transform_0, window_bounds = array<i64: 1, 8, 32>}, {transform_indices = @transform_1, window_bounds = array<i64: 1, 8, 32>}, {transform_indices = @transform_2, window_bounds = array<i64: 1, 8, 32>}, {transform_indices = @transform_3, window_bounds = array<i64: 1, 8, 32>}]} {
    %c0_i32 = arith.constant 0 : i32
    %0 = arith.cmpi eq, %arg2, %c0_i32 : i32
    %1 = arith.extui %0 : i1 to i32
    %c0_i32_0 = arith.constant 0 : i32
    %2 = arith.cmpi ne, %1, %c0_i32_0 : i32
    scf.if %2 {
      %cst_26 = arith.constant 0xFF800000 : f32
      %36 = vector.broadcast %cst_26 : f32 to vector<8x1xf32>
      %c0_27 = arith.constant 0 : index
      %c0_28 = arith.constant 0 : index
      %37 = vector.load %arg7[%c0_27, %c0_28] : memref<8x1xf32, #tpu.memory_space<vmem>>, vector<8x1xf32>
      tpu.vector_store %arg7[%c0_27, %c0_28], %36 {strides = array<i32>} : memref<8x1xf32, #tpu.memory_space<vmem>>, vector<8x1xf32>,
      %cst_29 = arith.constant 0.000000e+00 : f32
      %38 = vector.broadcast %cst_29 : f32 to vector<8x1xf32>
      %c0_30 = arith.constant 0 : index
      %c0_31 = arith.constant 0 : index
      %39 = vector.load %arg8[%c0_30, %c0_31] : memref<8x1xf32, #tpu.memory_space<vmem>>, vector<8x1xf32>
      tpu.vector_store %arg8[%c0_30, %c0_31], %38 {strides = array<i32>} : memref<8x1xf32, #tpu.memory_space<vmem>>, vector<8x1xf32>,
      %cst_32 = arith.constant 0.000000e+00 : f32
      %40 = vector.broadcast %cst_32 : f32 to vector<8x32xf32>
      %c0_33 = arith.constant 0 : index
      %c0_34 = arith.constant 0 : index
      %41 = vector.load %arg9[%c0_33, %c0_34] : memref<8x32xf32, #tpu.memory_space<vmem>>, vector<8x32xf32>
      tpu.vector_store %arg9[%c0_33, %c0_34], %40 {strides = array<i32>} : memref<8x32xf32, #tpu.memory_space<vmem>>, vector<8x32xf32>,
    } else {
    }
    %c0 = arith.constant 0 : index
    %c0_1 = arith.constant 0 : index
    %c0_2 = arith.constant 0 : index
    %3 = vector.load %arg3[%c0, %c0_1, %c0_2] : memref<1x8x32xbf16, #tpu.memory_space<vmem>>, vector<1x8x32xbf16>
    %4 = vector.shape_cast %3 : vector<1x8x32xbf16> to vector<8x32xbf16>
    %c0_3 = arith.constant 0 : index
    %c0_4 = arith.constant 0 : index
    %c0_5 = arith.constant 0 : index
    %5 = vector.load %arg4[%c0_3, %c0_4, %c0_5] : memref<1x8x32xbf16, #tpu.memory_space<vmem>>, vector<1x8x32xbf16>
    %6 = vector.shape_cast %5 : vector<1x8x32xbf16> to vector<8x32xbf16>
    %c0_6 = arith.constant 0 : index
    %c0_7 = arith.constant 0 : index
    %c0_8 = arith.constant 0 : index
    %7 = vector.load %arg5[%c0_6, %c0_7, %c0_8] : memref<1x8x32xbf16, #tpu.memory_space<vmem>>, vector<1x8x32xbf16>
    %8 = vector.shape_cast %7 : vector<1x8x32xbf16> to vector<8x32xbf16>
    %cst = arith.constant dense<0.000000e+00> : vector<8x8xf32>
    %9 = tpu.matmul %4, %6, %cst {dimension_numbers = #tpu.dot_dimension_numbers<[1], [1], [0], [0], [0, 0, 1, 0], [], []>} : vector<8x32xbf16>, vector<8x32xbf16>, vector<8x8xf32> -> vector<8x8xf32>
    %c0_9 = arith.constant 0 : index
    %c0_10 = arith.constant 0 : index
    %10 = vector.load %arg7[%c0_9, %c0_10] : memref<8x1xf32, #tpu.memory_space<vmem>>, vector<8x1xf32>
    %cst_11 = arith.constant dense<0xFF800000> : vector<8xf32>
    %11 = vector.multi_reduction <maximumf>, %9, %cst_11 [1] : vector<8x8xf32> to vector<8xf32>
    %12 = vector.shape_cast %11 : vector<8xf32> to vector<8x1xf32>
    %13 = arith.maximumf %10, %12 : vector<8x1xf32>
    %14 = arith.subf %10, %13 : vector<8x1xf32>
    %15 = math.exp %14 : vector<8x1xf32>
    %16 = vector.broadcast %13 : vector<8x1xf32> to vector<8x8xf32>
    %17 = arith.subf %9, %16 : vector<8x8xf32>
    %18 = math.exp %17 : vector<8x8xf32>
    %c0_12 = arith.constant 0 : index
    %c0_13 = arith.constant 0 : index
    %19 = vector.load %arg8[%c0_12, %c0_13] : memref<8x1xf32, #tpu.memory_space<vmem>>, vector<8x1xf32>
    %20 = arith.mulf %15, %19 : vector<8x1xf32>
    %cst_14 = arith.constant dense<0.000000e+00> : vector<8xf32>
    %21 = vector.multi_reduction <add>, %18, %cst_14 [1] : vector<8x8xf32> to vector<8xf32>
    %22 = vector.shape_cast %21 : vector<8xf32> to vector<8x1xf32>
    %23 = arith.addf %20, %22 : vector<8x1xf32>
    %c0_15 = arith.constant 0 : index
    %c0_16 = arith.constant 0 : index
    %24 = vector.load %arg8[%c0_15, %c0_16] : memref<8x1xf32, #tpu.memory_space<vmem>>, vector<8x1xf32>
    tpu.vector_store %arg8[%c0_15, %c0_16], %23 {strides = array<i32>} : memref<8x1xf32, #tpu.memory_space<vmem>>, vector<8x1xf32>,
    %25 = arith.truncf %18 : vector<8x8xf32> to vector<8x8xbf16>
    %cst_17 = arith.constant dense<0.000000e+00> : vector<8x32xf32>
    %26 = tpu.matmul %25, %8, %cst_17 {dimension_numbers = #tpu.dot_dimension_numbers<[1], [0], [0], [1], [0, 0, 1, 1], [], []>} : vector<8x8xbf16>, vector<8x32xbf16>, vector<8x32xf32> -> vector<8x32xf32>
    %c0_18 = arith.constant 0 : index
    %c0_19 = arith.constant 0 : index
    %27 = vector.load %arg9[%c0_18, %c0_19] : memref<8x32xf32, #tpu.memory_space<vmem>>, vector<8x32xf32>
    %28 = vector.broadcast %15 : vector<8x1xf32> to vector<8x32xf32>
    %29 = arith.mulf %28, %27 : vector<8x32xf32>
    %30 = arith.addf %29, %26 : vector<8x32xf32>
    %c0_20 = arith.constant 0 : index
    %c0_21 = arith.constant 0 : index
    %31 = vector.load %arg9[%c0_20, %c0_21] : memref<8x32xf32, #tpu.memory_space<vmem>>, vector<8x32xf32>
    tpu.vector_store %arg9[%c0_20, %c0_21], %30 {strides = array<i32>} : memref<8x32xf32, #tpu.memory_space<vmem>>, vector<8x32xf32>,
    %c0_22 = arith.constant 0 : index
    %c0_23 = arith.constant 0 : index
    %32 = vector.load %arg7[%c0_22, %c0_23] : memref<8x1xf32, #tpu.memory_space<vmem>>, vector<8x1xf32>
    tpu.vector_store %arg7[%c0_22, %c0_23], %13 {strides = array<i32>} : memref<8x1xf32, #tpu.memory_space<vmem>>, vector<8x1xf32>,
    %c0_i32_24 = arith.constant 0 : i32
    %33 = arith.cmpi eq, %arg2, %c0_i32_24 : i32
    %34 = arith.extui %33 : i1 to i32
    %c0_i32_25 = arith.constant 0 : i32
    %35 = arith.cmpi ne, %34, %c0_i32_25 : i32
    scf.if %35 {
      %c0_26 = arith.constant 0 : index
      %c0_27 = arith.constant 0 : index
      %36 = vector.load %arg8[%c0_26, %c0_27] : memref<8x1xf32, #tpu.memory_space<vmem>>, vector<8x1xf32>
      %37 = tpu.reciprocal %36 {approx = true} : vector<8x1xf32> -> vector<8x1xf32>
      %c0_28 = arith.constant 0 : index
      %c0_29 = arith.constant 0 : index
      %38 = vector.load %arg9[%c0_28, %c0_29] : memref<8x32xf32, #tpu.memory_space<vmem>>, vector<8x32xf32>
      %39 = vector.broadcast %37 : vector<8x1xf32> to vector<8x32xf32>
      %40 = arith.mulf %38, %39 : vector<8x32xf32>
      %c0_30 = arith.constant 0 : index
      %c0_31 = arith.constant 0 : index
      %c0_32 = arith.constant 0 : index
      %41 = vector.load %arg6[%c0_30, %c0_31, %c0_32] : memref<1x8x32xf32, #tpu.memory_space<vmem>>, vector<1x8x32xf32>
      %42 = vector.shape_cast %41 : vector<1x8x32xf32> to vector<8x32xf32>
      %43 = vector.shape_cast %40 : vector<8x32xf32> to vector<1x8x32xf32>
      tpu.vector_store %arg6[%c0_30, %c0_31, %c0_32], %43 {strides = array<i32>} : memref<1x8x32xf32, #tpu.memory_space<vmem>>, vector<1x8x32xf32>,
    } else {
    }
    return
  }
  func.func @transform_0(%arg0: i32, %arg1: i32, %arg2: i32) -> (i32, i32, i32) {
    %c0_i32 = arith.constant 0 : i32
    %c0_i32_0 = arith.constant 0 : i32
    return %arg0, %arg1, %c0_i32 : i32, i32, i32
  }
  func.func @transform_1(%arg0: i32, %arg1: i32, %arg2: i32) -> (i32, i32, i32) {
    %c0_i32 = arith.constant 0 : i32
    %c0_i32_0 = arith.constant 0 : i32
    return %arg0, %arg2, %c0_i32 : i32, i32, i32
  }
  func.func @transform_2(%arg0: i32, %arg1: i32, %arg2: i32) -> (i32, i32, i32) {
    %c0_i32 = arith.constant 0 : i32
    %c0_i32_0 = arith.constant 0 : i32
    return %arg0, %arg2, %c0_i32 : i32, i32, i32
  }
  func.func @transform_3(%arg0: i32, %arg1: i32, %arg2: i32) -> (i32, i32, i32) {
    %c0_i32 = arith.constant 0 : i32
    %c0_i32_0 = arith.constant 0 : i32
    return %arg0, %arg1, %c0_i32 : i32, i32, i32
  }
}

</mosaic_0001>

<bundles_post_ra>
// kernel: tpu_custom_call.1
= control target key start
LH: loop header
LB: loop body
LE: loop exit
PB: predicated region body
PF: predicated region fallthrough
CT: control target
= control target key end

     0   :  { %s1113_s0 = inlined_call_operand.hbm [shape: bf16[4,8,32], index: 0, kind: input, shape index: {}]   ;;  %s1114_s1 = inlined_call_operand.hbm [shape: bf16[4,8,32], index: 1, kind: input, shape index: {}]   ;;  %s1115_s2 = inlined_call_operand.hbm [shape: bf16[4,8,32], index: 2, kind: input, shape index: {}]   ;;  %s1116_s3 = inlined_call_operand.hbm [shape: f32[4,8,32], index: 3, kind: output, shape index: {}]  }
   0x1   :  { %1120 = sst [smem:[#allocation17_spill]] %s1114_s1 }
   0x2   :  { %8 = vsyncpa [#allocation6], 0 }
   0x3   :  { %10 = vsyncpa [#allocation6 + $0x1], 0 }
   0x4   :  { %11 = vsyncpa [#allocation9], 0 }
   0x5   :  { %13 = vsyncpa [#allocation9 + $0x1], 0 }
   0x6   :  { %14 = vsyncpa [#allocation7], 0 }
   0x7   :  { %16 = vsyncpa [#allocation7 + $0x1], 0  ;;  %s905_s12 = smov 0   ;;  %s907_s13 = smov 0  }
   0x8   :  { %s909_s14 = smov 0   ;;  %s911_s15 = smov 0  }
   0x9   :  { %s913_s16 = smov 0   ;;  %s915_s17 = smov 0  }
   0xa LB: > { %1121 = sst [smem:[#allocation15_spill]] %s871_s16  ;;  %s936_s18 = sadd.s32 4294967295, %s875_s17   ;;  %s875_s17 = sphi %s915_s17, %s22_s17   ;;  %s871_s16 = sphi %s913_s16, %s1132_s16   ;;  %s867_s15 = sphi %s911_s15, %s1131_s15   ;;  %s863_s14 = sphi %s909_s14, %s1135_s14   ;;  %s859_s13 = sphi %s907_s13, %s1134_s13   ;;  %s855_s12 = sphi %s905_s12, %s1133_s12  }
   0xb   : > { %s587_s19 = sadd.s32 4294967294, %s875_s17   ;;  %s41_s20 = sadd.s32 1, %s871_s16 }
   0xc   : > { %s50_s21 = sadd.s32 1, %s863_s14  ;;  %p43_p0 = scmp.ge.s32.totalorder %s41_s20, 4 }
   0xd   : > { %p57_p1 = scmp.ne.s32.totalorder %s863_s14, %s859_s13  ;;  %p58_p2 = scmp.eq.s32.totalorder %s875_s17, 0 }
   0xe   : > { %p63_p3 = scmp.ne.s32.totalorder %s859_s13, %s855_s12  ;;  %s1137_s20 = smov (%p43_p0, %s41_s20), 0 }
   0xf   : > { %1122 = sst [smem:[#allocation16_spill]] %s1137_s20  ;;  %p948_p4 = por %p58_p2, %p57_p1 }
  0x10   : > { %p64_p5 = scmp.eq.s32.totalorder %s936_s18, 0  ;;  %s45_s23 = ssub.s32 %s871_s16, %s1137_s20 }
  0x11   : > { %p145_p6 = scmp.eq.s32.totalorder %s936_s18, 3  ;;  %p48_p7 = scmp.eq.s32.totalorder %s45_s23, 0 }
  0x12   : > { %p956_p8 = por %p64_p5, %p63_p3  ;;  %p151_p10 = scmp.eq.s32.totalorder %s587_s19, 3 }
  0x13   : > { %p960_p9 = por %p145_p6, %p57_p1  ;;  %p645_p12 = scmp.lt.s32.totalorder %s875_s17, 4 }
  0x14   : > { %s965_s26 = scalar_select %p48_p7, %s863_s14, %s50_s21  }
  0x15   : > { %p967_p11 = por %p151_p10, %p63_p3  ;;  %s1117_s28 = sand.u32 1, %s863_s14  }
  0x16   : > { %s975_s29 = sshll.u32 %s1117_s28, 2  ;;  %s978_s30 = sshll.u32 %s871_s16, 6 }
  0x17   : > { %p982_p13 = pnand %p645_p12, %p948_p4  ;;  %s190_s5 = sand.u32 1, %s875_s17  }
  0x18   : > { %s1128_s1 = sld [smem:[#allocation17_spill]]  ;;  %s194_s9 = scalar_lea.vmem [#allocation8], %s975_s29 }
  0x19   : > { %s202_s10 = sshll.u32 %s194_s9, 4  ;;  %p596_p0 = scmp.ge.s32.totalorder %s875_s17, 1  ;;  %s203_s10 = int_to_ptr.vmem [resolvable:$true] %s202_s10 }
  0x1a   : > { %p226_p1 = scmp.lt.s32.totalorder %s875_s17, 5  ;;  %s994_s11 = scalar_lea.sflag [#allocation9], %s190_s5 }
  0x1b   : > { %p709_p2 = pneg %p982_p13  ;;  %s720_s19 = scalar_lea.vmem %s203_s10, 64 }
  0x1c   : > { %p721_p3 = scmp.ne.s32.totalorder %s203_s10, %s720_s19  ;;  %s877_s21 = smov [#allocation8]  }
  0x1d   : > { %s725_s22 = sshll.u32 %s877_s21, 4  ;;  %s726_s22 = int_to_ptr.vmem [resolvable:$false] %s725_s22 }
  0x1e   : > { %s200_s8 = scalar_lea.hbm %s1128_s1, %s978_s30  ;;  %p723_p4 = pnand %p721_p3, %p709_p2 }
  0x1f   : > { %s727_s23 = scalar_lea.vmem %s726_s22, 128  ;;  %p728_p6 = scmp.lt.s32.totalorder %s203_s10, %s726_s22 }
  0x20   : > { %p724_p5 = pneg %p723_p4  ;;  %p729_p7 = scmp.lt.s32.totalorder %s727_s23, %s720_s19 }
  0x22   : > { %p730_p10 = por %p729_p7, %p728_p6 }
  0x24   : > { %p731_p12 = pnand %p730_p10, %p724_p5 }
  0x26   : > { %734 = shalt.err (!%p731_p12)
}
  0x27   : > { %637 = dma.hbm_to_vmem [thread:$0]  (!%p982_p13), %s200_s8, 64, %s203_s10, %s994_s11  }
  0x28   : > { %p1008_p3 = pnand %p596_p0, %p226_p1  ;;  %s181_s9 = scalar_lea.hbm %s1113_s0, %s978_s30 }
  0x29   : > { %s175_s19 = scalar_lea.vmem [#allocation5], %s975_s29  ;;  %s219_s28 = scalar_lea.hbm %s1115_s2, %s978_s30 }
  0x2a   : > { %s183_s21 = sshll.u32 %s175_s19, 4  ;;  %s1130_s1 = sand.u32 1, %s863_s14   ;;  %s184_s21 = int_to_ptr.vmem [resolvable:$true] %s183_s21 }
  0x2b   : > { %s172_s20 = scalar_lea.sflag [#allocation6], %s1130_s1  ;;  %s748_s8 = scalar_lea.vmem %s184_s21, 64 }
  0x2c   : > { %p749_p4 = scmp.ne.s32.totalorder %s184_s21, %s748_s8  ;;  %s878_s10 = smov [#allocation5]  }
  0x2d   : > { %s753_s16 = sshll.u32 %s878_s10, 4  ;;  %s754_s16 = int_to_ptr.vmem [resolvable:$false] %s753_s16 }
  0x2e   : > { %p751_p0 = pnand %p749_p4, %p709_p2  ;;  %s755_s6 = scalar_lea.vmem %s754_s16, 128 }
  0x2f   : > { %p756_p5 = scmp.lt.s32.totalorder %s184_s21, %s754_s16  ;;  %p757_p6 = scmp.lt.s32.totalorder %s755_s6, %s748_s8 }
  0x30   : > { %p752_p1 = pneg %p751_p0 }
  0x31   : > { %p758_p7 = por %p757_p6, %p756_p5 }
  0x33   : > { %p759_p10 = pnand %p758_p7, %p752_p1 }
  0x35   : > { %762 = shalt.err (!%p759_p10)
}
  0x36   : > { %634 = dma.hbm_to_vmem [thread:$0]  (!%p982_p13), %s181_s9, 64, %s184_s21, %s172_s20  }
  0x37   : > { %s213_s1 = scalar_lea.vmem [#allocation10], %s975_s29  ;;  %s879_s22 = smov [#allocation10]  }
  0x38   : > { %s221_s7 = sshll.u32 %s213_s1, 4  ;;  %s781_s16 = sshll.u32 %s879_s22, 4  ;;  %s222_s7 = int_to_ptr.vmem [resolvable:$true] %s221_s7  ;;  %s782_s16 = int_to_ptr.vmem [resolvable:$false] %s781_s16 }
  0x39   : > { %s776_s19 = scalar_lea.vmem %s222_s7, 64  ;;  %s783_s23 = scalar_lea.vmem %s782_s16, 128 }
  0x3a   : > { %p777_p12 = scmp.ne.s32.totalorder %s222_s7, %s776_s19  ;;  %p784_p1 = scmp.lt.s32.totalorder %s222_s7, %s782_s16 }
  0x3b   : > { %p785_p5 = scmp.lt.s32.totalorder %s783_s23, %s776_s19 }
  0x3c   : > { %p779_p4 = pnand %p777_p12, %p709_p2 }
  0x3d   : > { %p786_p6 = por %p785_p5, %p784_p1 }
  0x3e   : > { %p780_p0 = pneg %p779_p4 }
  0x40   : > { %p787_p7 = pnand %p786_p6, %p780_p0 }
  0x42   : > { %790 = shalt.err (!%p787_p7)
}
  0x43   : > { %640 = dma.hbm_to_vmem [thread:$0]  (!%p982_p13), %s219_s28, 64, %s222_s7, %s994_s11  }
  0x44   : > { %230 = sbr.rel (%p1008_p3) target bundleno = 865 (0x361), region = 32  ;;  %s1043_s9 = sand.u32 (!%p1008_p3), 1, %s859_s13  }
  0x45   : > { %s1046_s21 = sshll.u32 (!%p1008_p3), %s1043_s9, 2  ;;  %s233_s4 = scalar_lea.sflag (!%p1008_p3), [#allocation6], %s1043_s9 }
  0x46   : > { %s236_s8 = scalar_lea.vmem (!%p1008_p3), [#allocation5], %s1046_s21 }
  0x49   : > { %842 = dma.done.wait (%p956_p8), %s233_s4, 64  }
  0x4a   : > { %844 = vsyncadd (%p956_p8), %s233_s4, 4294967232  ;;  %s241_s28 = sand.u32 1, %s936_s18   ;;  %s245_s11 = scalar_lea.vmem [#allocation8], %s1046_s21 }
  0x4b   : > { %s242_s30 = scalar_lea.sflag [#allocation9], %s241_s28 }
  0x4c   : > { %846 = dma.done.wait (%p956_p8), %s242_s30, 128  }
  0x4d   : > { %848 = vsyncadd (%p956_p8), %s242_s30, 4294967168  ;;  %vm295_vm0 = vcmask 261120   ;;  %v880_v0 = vmov 0.0   ;;  %vm881_vm1 = vmmov 0   ;;  %v298_v1 = vld [vmem:[%s245_s11] sm:$0xf] }
  0x4e   : > { %611 = vmatprep.subr.bf16.mxu0 %v880_v0  ;;  %296 = vst.msk [vmem:[#allocation4] sm:$0xff] %vm295_vm0, %v880_v0  ;;  %613 = vmatprep.mubr.msk.bf16.mxu0 %vm881_vm1, %v880_v0  ;;  %v305_v2 = vsel %vm295_vm0, %v298_v1, 0  ;;  %v297_v3 = vld [vmem:[%s236_s8] sm:$0xf]  ;;  %vm292_vm2 = vcmask 7168   ;;  %v882_v4 = vmov -inf  }
  0x4f   : > { %617 = vmatprep.subr.bf16.mxu1 %v880_v0  ;;  %619 = vmatprep.mubr.msk.bf16.mxu1 %vm881_vm1, %v880_v0  ;;  %293 = vst.msk [vmem:[#allocation2] sm:$0xff] %vm292_vm2, %v882_v4  ;;  %294 = vst.msk [vmem:[#allocation3] sm:$0xff] %vm292_vm2, %v880_v0  ;;  %vm348_vm3 = vcmask 64512   ;;  %v883_v10 = vmov 0   ;;  %vm376_vm4 = vcmask 1043456   ;;  %s254_s18 = scalar_lea.vmem [#allocation10], %s1046_s21 }
  0x50   : > { %612 = vmatpush3.bf16.xpose.msra.mxu0 %v305_v2  ;;  %699 = vset.pattern.permute.xlu0 %v883_v10  ;;  %v299_v15 = vld [vmem:[%s254_s18] sm:$0xf]  ;;  %s600_s24 = sshll.u32 %s1043_s9, 3  ;;  %s604_s5 = sshll.u32 %s867_s15, 7 }
  0x51   : > { %700 = vset.pattern.permute.xlu1 %v883_v10  ;;  %v378_v16 = vsel %vm376_vm4, %v299_v15, 0  ;;  %s286_s10 = scalar_lea.vmem [#allocation11], %s600_s24  ;;  %s456_s19 = scalar_lea.hbm %s1116_s3, %s604_s5 }
  0x52   : > { %618 = vmatpush3.bf16.msra.mxu1 %v378_v16  ;;  %s458_s6 = sshll.u32 %s286_s10, 4  ;;  %s444_s22 = scalar_lea.sflag [#allocation7], %s1043_s9  ;;  %s459_s6 = int_to_ptr.vmem [resolvable:$true] %s458_s6 }
  0x53   : > { %s791_s16 = scalar_lea.vmem %s459_s6, 128  ;;  %s884_s23 = smov [#allocation11]  }
  0x54   : > { %p792_p8 = scmp.ne.s32.totalorder %s459_s6, %s791_s16  ;;  %s795_s15 = sshll.u32 %s884_s23, 4  ;;  %s796_s15 = int_to_ptr.vmem [resolvable:$false] %s795_s15 }
  0x55   : > { %v420_v31 = vld [vmem:[#allocation4] sm:$0xff]  ;;  %s797_s20 = scalar_lea.vmem %s796_s15, 256  ;;  %p798_p3 = scmp.lt.s32.totalorder %s459_s6, %s796_s15 }
  0x56   : > { %v347_v11 = vld [vmem:[#allocation2] sm:$0xff]  ;;  %v364_v25 = vld [vmem:[#allocation3] sm:$0xff]  ;;  %p793_p13 = pnand %p792_p8, %p960_p9  ;;  %p799_p10 = scmp.lt.s32.totalorder %s797_s20, %s791_s16 }
  0x57   : > { %614 = vmatmul.mubr.msk.bf16.vlgmr.msra.gmra.mxu0 %vm295_vm0, %v297_v3 }
  0x58   : > { %p794_p2 = pneg %p793_p13  ;;  %p800_p12 = por %p799_p10, %p798_p3 }
  0x5a   : > { %p801_p4 = pnand %p800_p12, %p794_p2 }
 0x117   : > { %v341_v5 = vpop.f32.mrf.mxu0 }
 0x118   : > { %v349_v6 = vsel %vm348_vm3, %v341_v5, -inf }
 0x119   : > { %350 = vmax.xlane.f32.xlu0 %v349_v6  ;;  %v615_v7 = vpop.f32.mrf.mxu0 }
 0x11b   : > { %v344_v8 = vpop.f32.mrf.mxu0 }
 0x11d   : > { %v616_v9 = vpop.f32.mrf.mxu0 }
 0x1a2   : > { %v351_v12 = vpop.xlane.xlu0 %350 }
 0x1a3   : > { %v352_v13 = vmax.f32 %v347_v11, %v351_v12 }
 0x1a5   : > { %v353_v14 = vsub.f32 %v347_v11, %v352_v13  ;;  %429 = vst.msk [vmem:[#allocation2] sm:$0xff] %vm292_vm2, %v352_v13  ;;  %358 = vperm.xlu0 %699, %v352_v13  }
 0x1a7   : > { %v354_v21 = vmul.f32 1.442695, %v353_v14 }
 0x220   : > { %v359_v17 = vpop.permute.xlu0 %358 }
 0x221   : > { %v361_v18 = vsub.f32 %v341_v5, %v359_v17 }
 0x223   : > { %v362_v19 = vmul.f32 1.442695, %v361_v18 }
 0x225   : > { %701 = vpow2.f32 %v362_v19 }
 0x226   : > { %703 = vpow2.f32 %v354_v21 }
 0x232   : > { %v702_v20 = vpop.eup %701 }
 0x233   : > { %v366_v22 = vsel %vm348_vm3, %v702_v20, 0.0  ;;  %v372_v23 = vpack.c.bf16 %v702_v20, %v702_v20  ;;  %v704_v24 = vpop.eup %703 }
 0x234   : > { %367 = vadd.xlane.f32.xlu1 %v366_v22  ;;  %v365_v26 = vmul.f32 %v704_v24, %v364_v25 }
 0x235   : > { %620 = vmatmul.mubr.msk.bf16.vlgmr.msra.gmra.mxu1 %vm348_vm3, %v372_v23 }
 0x245   : > { %423 = vperm.xlu1 %700, %v704_v24  }
 0x2bd   : > { %v368_v27 = vpop.xlane.xlu1 %367 }
 0x2be   : > { %v369_v28 = vadd.f32 %v368_v27, %v365_v26 }
 0x2c0   : > { %371 = vst.msk [vmem:[#allocation3] sm:$0xff] %vm292_vm2, %v369_v28 }
 0x2c1   : > { %v424_v32 = vpop.permute.xlu1 %423 }
 0x2c2   : > { %v426_v33 = vmul.f32 %v424_v32, %v420_v31 }
 0x2c7   : > { %v433_v29 = vld [vmem:[#allocation3] sm:$0xff] }
 0x2c8   : > { %705 = vrcp.f32 %v433_v29 }
 0x2d5   : > { %v706_v30 = vpop.eup %705 }
 0x2d6   : > { %438 = vperm.xlu1 %700, %v706_v30  }
 0x2f5   : > { %v414_v34 = vpop.f32.mrf.mxu1 }
 0x2f6   : > { %v427_v35 = vadd.f32 %v426_v33, %v414_v34 }
 0x2f7   : > { %v621_v36 = vpop.f32.mrf.mxu1 }
 0x2f8   : > { %428 = vst.msk [vmem:[#allocation4] sm:$0xff] %vm295_vm0, %v427_v35 }
 0x2f9   : > { %v417_v37 = vpop.f32.mrf.mxu1 }
 0x2fb   : > { %v622_v38 = vpop.f32.mrf.mxu1 }
 0x2ff   : > { %v435_v39 = vld [vmem:[#allocation4] sm:$0xff] }
 0x351   : > { %v439_v40 = vpop.permute.xlu1 %438 }
 0x352   : > { %v441_v41 = vmul.f32 %v439_v40, %v435_v39 }
 0x354   : > { %442 = vst.msk [vmem:[%s286_s10] sm:$0xff] %vm295_vm0, %v441_v41 }
 0x355   : > { %804 = shalt.err (!%p801_p4)
}
 0x356   : > { %s805_s29 = scalar_lea.hbm %s456_s19, 128  ;;  %s809_s4 = scalar_lea.hbm %s1116_s3, 512 }
 0x357   : > { %p806_p0 = scmp.ne.s32.totalorder %s456_s19, %s805_s29  ;;  %p810_p6 = scmp.lt.s32.totalorder %s456_s19, %s1116_s3 }
 0x358   : > { %p811_p7 = scmp.lt.s32.totalorder %s809_s4, %s805_s29 }
 0x359   : > { %p807_p1 = pnand %p806_p0, %p960_p9 }
 0x35a   : > { %p812_p8 = por %p811_p7, %p810_p6 }
 0x35b   : > { %p808_p5 = pneg %p807_p1 }
 0x35d   : > { %p813_p13 = pnand %p812_p8, %p808_p5 }
 0x35f   : > { %816 = shalt.err (!%p813_p13)
}
 0x360   : > { %629 = dma.vmem_to_hbm [thread:$0]  (%p960_p9), %s459_s6, 128, %s456_s19, %s444_s22  }
 0x361 PF: > { %p646_p2 = scmp.ge.s32.totalorder %s875_s17, 2  ;;  %s470_s30 = sand.u32 1, %s855_s12  }
 0x362   : > { %s471_s11 = scalar_lea.sflag [#allocation7], %s470_s30 }
 0x363   : > { %p642_p3 = pnand %p646_p2, %p967_p11 }
 0x365   : > { %p643_p10 = pneg %p642_p3 }
 0x367   : > { %850 = dma.done.wait (%p643_p10), %s471_s11, 128  }
 0x368   : > { %852 = vsyncadd (%p643_p10), %s471_s11, 4294967168  ;;  %s22_s17 = sadd.s32 1, %s875_s17   ;;  %s1131_s15 = sld [smem:[#allocation15_spill]] }
 0x369   : > { %p19_p12 = scmp.ge.s32.totalorder %s22_s17, 6   ;;  %s1132_s16 = sld [smem:[#allocation16_spill]] }
 0x36a   : > { %s1133_s12 = smov %s859_s13  ;;  %s1134_s13 = smov %s863_s14 }
 0x36b   : > { %s1135_s14 = smov %s965_s26  ;;  %21 = sbr.rel (!%p19_p12) target bundleno = 10 (0xa), region = 109 }
 0x370   :  { %476 = vsyncpa [#allocation6], 1 }
 0x371   :  { %478 = vsyncpa [#allocation6 + $0x1], 1 }
 0x372   :  { %479 = vsyncpa [#allocation9], 1 }
 0x373   :  { %481 = vsyncpa [#allocation9 + $0x1], 1 }
 0x374   :  { %482 = vsyncpa [#allocation7], 1 }
 0x375   :  { %484 = vsyncpa [#allocation7 + $0x1], 1 }

</bundles_post_ra>
